<compile_context>
chip_gen: v5e
topology: v5e:2x2
jax: 0.10.0
libtpu: 0.0.40
codegen_flags: <defaults>
</compile_context>

<pallas_src>
import functools

import jax
import jax.numpy as jnp
import numpy as np
from jax.experimental import pallas as pl
from jax.experimental.pallas import tpu as pltpu

ALPHA = 0.5
TAU = 3.0
LEN_NUM_KEEP = 4
NUM_CLASSES = 8


# --------------------------- tiling helpers --------------------------------
def _vmem_budget_and_limit():
    """(tile budget, scoped vmem limit) in bytes, sized per chip generation."""
    try:
        phys = pltpu.get_tpu_info().vmem_capacity_bytes
    except Exception:
        phys = 64 * 1024 * 1024            # conservative (v7x per-TC VMEM)
    budget = int(phys * 0.55)              # double-buffered tiles + scratch
    limit = int(phys * 0.75)               # scoped VMEM limit for the compiler
    return budget, limit


def _choose_tb(bsz, target=256):
    """Batch tile: full batch if small, else largest mult-of-8 divisor <= target."""
    if bsz <= target:
        return bsz
    best = bsz
    for t in range(8, target + 1, 8):
        if bsz % t == 0:
            best = t
    return best


def _choose_tk(feat_pad, tb, nc, x_bytes, budget):
    """Largest K tile (multiple of 128, divides feat_pad) whose double-buffered
    tiles fit the VMEM budget.  feat_pad is already a multiple of 128."""
    fixed = tb * max(nc, 128) * 4 * 4 + (1 << 20)     # acc/student/bias + slack
    best = 128
    t = 128
    while t <= feat_pad:
        if feat_pad % t == 0:
            need = 2 * (tb * t * x_bytes + max(nc, 8) * t * 2) + fixed
            if need <= budget:
                best = t
        t += 128
    return best


# ------- fused kernel: teacher linear head (K-tiled MXU) + CE/KD loss ------
def _fused_teacher_loss_kernel(x_ref, wt_ref, b_ref, s_ref, lab_ref,
                               out_ref, acc_ref, *, alpha, tau, inv_b):
    k = pl.program_id(1)

    @pl.when(k == 0)
    def _init():
        acc_ref[...] = jnp.zeros_like(acc_ref)

    # In-VMEM bf16 cast of the x tile (input streams HBM in its native dtype),
    # lane-dense [C, tk] bf16 weight tile, f32 MXU accumulation.
    x_bf16 = x_ref[...].astype(jnp.bfloat16)
    w_bf16 = wt_ref[...].astype(jnp.bfloat16)
    acc_ref[...] += jax.lax.dot_general(
        x_bf16, w_bf16,
        dimension_numbers=(((1,), (1,)), ((), ())),
        preferred_element_type=jnp.float32)

    @pl.when(k == pl.num_programs(1) - 1)
    def _finalize():
        t = acc_ref[...] + b_ref[...].astype(jnp.float32)   # teacher logits [tb, C]
        s = s_ref[...].astype(jnp.float32)                   # student logits [tb, C]
        labels = lab_ref[...]                                 # [tb, 1] int32
        tb, nclass = s.shape
        inv_tau = 1.0 / tau

        # One shift of s reused for log_softmax(s) and log_softmax(s / tau):
        # max(s / tau) == max(s) / tau, so shift-then-scale is valid.
        s_shift = s - jnp.max(s, axis=-1, keepdims=True)
        s_logp = s_shift - jnp.log(
            jnp.sum(jnp.exp(s_shift), axis=-1, keepdims=True))
        s_shift_tau = s_shift * inv_tau
        s_logp_tau = s_shift_tau - jnp.log(
            jnp.sum(jnp.exp(s_shift_tau), axis=-1, keepdims=True))

        # base criterion: cross entropy with hard labels (one-hot via iota).
        class_ids = jax.lax.broadcasted_iota(jnp.int32, (tb, nclass), 1)
        onehot = (class_ids == labels).astype(jnp.float32)
        base_sum = -jnp.sum(onehot * s_logp)

        # soft distillation: KL(teacher || student) at temperature tau.
        ts = t * inv_tau
        ts = ts - jnp.max(ts, axis=-1, keepdims=True)
        t_exp = jnp.exp(ts)
        t_sum = jnp.sum(t_exp, axis=-1, keepdims=True)
        t_probs = t_exp / t_sum
        t_logp = ts - jnp.log(t_sum)
        kd_sum = jnp.sum(t_probs * (t_logp - s_logp_tau))

        # Per-batch-tile partial of the full loss (global 1/B baked in);
        # partials are summed in JAX.
        out_ref[0, 0] = (base_sum * (1.0 - alpha)
                         + kd_sum * (tau * tau) * alpha) * inv_b


def fused_teacher_and_loss(x2d, w_t, bias, student_logits, labels, *,
                           alpha, tau):
    """Teacher head (x2d @ w_t.T + bias) and the distillation loss, fused.

    x2d:   [B, feat]  (any float dtype; cast to bf16 in-kernel)
    w_t:   [C, feat]  pre-transposed teacher head weight (bf16 recommended)
    bias:  [1, C] f32
    Grid: (batch tiles "parallel", K tiles "arbitrary").  Teacher logits live
    in an f32 VMEM accumulator; the loss epilogue runs under pl.when(last K)
    and writes one SMEM scalar per batch tile.
    """
    bsz, feat = x2d.shape
    nc = w_t.shape[0]

    # Zero-pad K to a multiple of 128 (zeros don't change the dot).
    feat_pad = ((feat + 127) // 128) * 128
    if feat_pad != feat:
        x2d = jnp.pad(x2d, ((0, 0), (0, feat_pad - feat)))
        w_t = jnp.pad(w_t, ((0, 0), (0, feat_pad - feat)))

    budget, vmem_limit = _vmem_budget_and_limit()
    tb = _choose_tb(bsz)
    tk = _choose_tk(feat_pad, tb, nc, jnp.dtype(x2d.dtype).itemsize, budget)
    n_btiles = bsz // tb
    kt = feat_pad // tk

    labels2d = labels.reshape(bsz, 1).astype(jnp.int32)
    bias2d = bias.reshape(1, nc).astype(jnp.float32)

    kern = functools.partial(_fused_teacher_loss_kernel,
                             alpha=alpha, tau=tau, inv_b=1.0 / bsz)
    partials = pl.pallas_call(
        kern,
        out_shape=jax.ShapeDtypeStruct((n_btiles, 1), jnp.float32),
        grid_spec=pltpu.PrefetchScalarGridSpec(
            num_scalar_prefetch=0,
            grid=(n_btiles, kt),
            in_specs=[
                pl.BlockSpec((tb, tk), lambda b, k: (b, k)),   # x tile  [tb, tk]
                pl.BlockSpec((nc, tk), lambda b, k: (0, k)),   # w^T tile [C, tk]
                pl.BlockSpec((1, nc), lambda b, k: (0, 0)),    # bias    [1, C]
                pl.BlockSpec((tb, nc), lambda b, k: (b, 0)),   # student [tb, C]
                pl.BlockSpec((tb, 1), lambda b, k: (b, 0)),    # labels  [tb, 1]
            ],
            out_specs=pl.BlockSpec((1, 1), lambda b, k: (b, 0),
                                   memory_space=pltpu.MemorySpace.SMEM),
            scratch_shapes=[pltpu.VMEM((tb, nc), jnp.float32)],  # teacher acc
        ),
        compiler_params=pltpu.CompilerParams(
            dimension_semantics=("parallel", "arbitrary"),
            vmem_limit_bytes=vmem_limit),
    )(x2d, w_t, bias2d, student_logits, labels2d)
    return jnp.sum(partials)


# ----------------------- DistillationLoss.forward --------------------------
def distillation_forward(inputs, outputs, labels, attn, teacher_w_t, teacher_b,
                         *, alpha, tau, len_num_keep, compute_len_keep=True):
    # len_keep = topk(attn.mean(dim=1)[:, 0, 1:], k).indices — a few KB of
    # data; plain JAX so XLA fuses slice + head-mean + CLS-drop for free.
    if compute_len_keep:
        cls_mean = jnp.mean(attn[:, :, 0, 1:].astype(jnp.float32), axis=1)
        _, len_keep = jax.lax.top_k(cls_mean, len_num_keep)
        # TODO(synk): real teacher_model(inputs, len_keep, maskedkd) is a full
        # ViT; the synthetic linear-head teacher below does not consume len_keep.
        del len_keep

    bsz = inputs.shape[0]
    x2d = inputs.reshape(bsz, -1)   # native dtype; bf16 cast happens in-VMEM

    # base_criterion (CrossEntropy) + teacher head + soft-KD, fused in one kernel.
    return fused_teacher_and_loss(x2d, teacher_w_t, teacher_b, outputs, labels,
                                  alpha=alpha, tau=tau)


if __name__ == "__main__":
    key = jax.random.PRNGKey(0)
    k_in, k_out, k_lab, k_attn, k_w = jax.random.split(key, 5)

    B, C_IN, HW = 2, 4, 16
    HEADS, N_TOK = 4, 9  # 1 CLS token + 8 patch tokens

    inputs = jax.random.normal(k_in, (B, C_IN, HW, HW), jnp.float32)   # NCHW
    outputs = jax.random.normal(k_out, (B, NUM_CLASSES), jnp.float32)  # student logits
    labels = jax.random.randint(k_lab, (B,), 0, NUM_CLASSES, jnp.int32)
    attn = jax.nn.softmax(
        jax.random.normal(k_attn, (B, HEADS, N_TOK, N_TOK), jnp.float32), axis=-1)

    feat = C_IN * HW * HW                                              # 1024
    # Teacher head weight in PyTorch nn.Linear layout [out=C, in=feat] (lane-
    # dense K for the kernel), stored bf16 once as the precision contract.
    teacher_w_t = (jax.random.normal(k_w, (NUM_CLASSES, feat), jnp.float32)
                   * 0.02).astype(jnp.bfloat16)
    teacher_b = jnp.zeros((1, NUM_CLASSES), jnp.float32)

    loss = distillation_forward(inputs, outputs, labels, attn,
                                teacher_w_t, teacher_b,
                                alpha=ALPHA, tau=TAU,
                                len_num_keep=LEN_NUM_KEEP)
    loss = jax.block_until_ready(loss)

    # ---- pure-JAX reference check (same semantics as the PyTorch module;
    # teacher head uses the same bf16-operand / f32-accumulate contract) ----
    x2d_ref = inputs.reshape(B, -1)
    teacher_ref = jnp.dot(x2d_ref.astype(jnp.bfloat16), teacher_w_t.T,
                          preferred_element_type=jnp.float32) + teacher_b
    s_logp = jax.nn.log_softmax(outputs, axis=1)
    base_ref = -jnp.mean(jnp.take_along_axis(s_logp, labels[:, None], axis=1))
    t_probs = jax.nn.softmax(teacher_ref / TAU, axis=1)
    s_logp_t = jax.nn.log_softmax(outputs / TAU, axis=1)
    kl_ref = jnp.mean(
        jnp.sum(t_probs * (jnp.log(t_probs) - s_logp_t), axis=1)) * (TAU * TAU)
    loss_ref = base_ref * (1.0 - ALPHA) + kl_ref * ALPHA
    assert np.allclose(float(loss), float(loss_ref), rtol=1e-3, atol=1e-3), \
        (float(loss), float(loss_ref))

    print("KERNEL_OK")
</pallas_src>

<mosaic_0001>
module attributes {stable_mosaic.version = 11 : i64} {
  func.func @_fused_teacher_loss_kernel(%arg0: i32, %arg1: i32, %arg2: memref<2x1024xf32, #tpu.memory_space<vmem>>, %arg3: memref<8x1024xbf16, #tpu.memory_space<vmem>>, %arg4: memref<1x8xf32, #tpu.memory_space<vmem>>, %arg5: memref<2x8xf32, #tpu.memory_space<vmem>>, %arg6: memref<2x1xi32, #tpu.memory_space<vmem>>, %arg7: memref<1x1xf32, #tpu.memory_space<smem>>, %arg8: memref<2x8xf32, #tpu.memory_space<vmem>>) attributes {dimension_semantics = [#tpu.dimension_semantics<parallel>, #tpu.dimension_semantics<arbitrary>], iteration_bounds = array<i64: 1, 1>, scalar_prefetch = 0 : i64, scratch_operands = 1 : i64, tpu.core_type = #tpu.core_type<tc>, window_params = [{transform_indices = @transform_0, window_bounds = array<i64: 2, 1024>}, {transform_indices = @transform_1, window_bounds = array<i64: 8, 1024>}, {pipeline_mode = #tpu.pipeline_mode<synchronous>, transform_indices = @transform_2, window_bounds = array<i64: 1, 8>}, {transform_indices = @transform_3, window_bounds = array<i64: 2, 8>}, {transform_indices = @transform_4, window_bounds = array<i64: 2, 1>}, {transform_indices = @transform_5, window_bounds = array<i64: 1, 1>}]} {
    %c0_i32 = arith.constant 0 : i32
    %0 = arith.cmpi eq, %arg1, %c0_i32 : i32
    %1 = arith.extui %0 : i1 to i32
    %c0_i32_0 = arith.constant 0 : i32
    %2 = arith.cmpi ne, %1, %c0_i32_0 : i32
    scf.if %2 {
      %cst_10 = arith.constant 0.000000e+00 : f32
      %13 = vector.broadcast %cst_10 : f32 to vector<2x8xf32>
      %c0_11 = arith.constant 0 : index
      %c0_12 = arith.constant 0 : index
      %14 = vector.load %arg8[%c0_11, %c0_12] : memref<2x8xf32, #tpu.memory_space<vmem>>, vector<2x8xf32>
      tpu.vector_store %arg8[%c0_11, %c0_12], %13 {strides = array<i32>} : memref<2x8xf32, #tpu.memory_space<vmem>>, vector<2x8xf32>,
    } else {
    }
    %c0 = arith.constant 0 : index
    %c0_1 = arith.constant 0 : index
    %3 = vector.load %arg2[%c0, %c0_1] : memref<2x1024xf32, #tpu.memory_space<vmem>>, vector<2x1024xf32>
    %4 = arith.truncf %3 : vector<2x1024xf32> to vector<2x1024xbf16>
    %c0_2 = arith.constant 0 : index
    %c0_3 = arith.constant 0 : index
    %5 = vector.load %arg3[%c0_2, %c0_3] : memref<8x1024xbf16, #tpu.memory_space<vmem>>, vector<8x1024xbf16>
    %c0_4 = arith.constant 0 : index
    %c0_5 = arith.constant 0 : index
    %6 = vector.load %arg8[%c0_4, %c0_5] : memref<2x8xf32, #tpu.memory_space<vmem>>, vector<2x8xf32>
    %cst = arith.constant dense<0.000000e+00> : vector<2x8xf32>
    %7 = tpu.matmul %4, %5, %cst {dimension_numbers = #tpu.dot_dimension_numbers<[1], [1], [0], [0], [0, 0, 1, 0], [], []>} : vector<2x1024xbf16>, vector<8x1024xbf16>, vector<2x8xf32> -> vector<2x8xf32>
    %8 = arith.addf %6, %7 : vector<2x8xf32>
    %c0_6 = arith.constant 0 : index
    %c0_7 = arith.constant 0 : index
    %9 = vector.load %arg8[%c0_6, %c0_7] : memref<2x8xf32, #tpu.memory_space<vmem>>, vector<2x8xf32>
    tpu.vector_store %arg8[%c0_6, %c0_7], %8 {strides = array<i32>} : memref<2x8xf32, #tpu.memory_space<vmem>>, vector<2x8xf32>,
    %c0_i32_8 = arith.constant 0 : i32
    %10 = arith.cmpi eq, %arg1, %c0_i32_8 : i32
    %11 = arith.extui %10 : i1 to i32
    %c0_i32_9 = arith.constant 0 : i32
    %12 = arith.cmpi ne, %11, %c0_i32_9 : i32
    scf.if %12 {
      %c0_10 = arith.constant 0 : index
      %c0_11 = arith.constant 0 : index
      %13 = vector.load %arg8[%c0_10, %c0_11] : memref<2x8xf32, #tpu.memory_space<vmem>>, vector<2x8xf32>
      %c0_12 = arith.constant 0 : index
      %c0_13 = arith.constant 0 : index
      %14 = vector.load %arg4[%c0_12, %c0_13] : memref<1x8xf32, #tpu.memory_space<vmem>>, vector<1x8xf32>
      %15 = vector.broadcast %14 : vector<1x8xf32> to vector<2x8xf32>
      %16 = arith.addf %13, %15 : vector<2x8xf32>
      %c0_14 = arith.constant 0 : index
      %c0_15 = arith.constant 0 : index
      %17 = vector.load %arg5[%c0_14, %c0_15] : memref<2x8xf32, #tpu.memory_space<vmem>>, vector<2x8xf32>
      %c0_16 = arith.constant 0 : index
      %c0_17 = arith.constant 0 : index
      %18 = vector.load %arg6[%c0_16, %c0_17] : memref<2x1xi32, #tpu.memory_space<vmem>>, vector<2x1xi32>
      %cst_18 = arith.constant dense<0xFF800000> : vector<2xf32>
      %19 = vector.multi_reduction <maximumf>, %17, %cst_18 [1] : vector<2x8xf32> to vector<2xf32>
      %20 = vector.shape_cast %19 : vector<2xf32> to vector<2x1xf32>
      %21 = vector.broadcast %20 : vector<2x1xf32> to vector<2x8xf32>
      %22 = arith.subf %17, %21 : vector<2x8xf32>
      %23 = math.exp %22 : vector<2x8xf32>
      %cst_19 = arith.constant dense<0.000000e+00> : vector<2xf32>
      %24 = vector.multi_reduction <add>, %23, %cst_19 [1] : vector<2x8xf32> to vector<2xf32>
      %25 = vector.shape_cast %24 : vector<2xf32> to vector<2x1xf32>
      %26 = math.log %25 : vector<2x1xf32>
      %27 = vector.broadcast %26 : vector<2x1xf32> to vector<2x8xf32>
      %28 = arith.subf %22, %27 : vector<2x8xf32>
      %cst_20 = arith.constant 0.333333343 : f32
      %29 = vector.broadcast %cst_20 : f32 to vector<2x8xf32>
      %30 = arith.mulf %22, %29 : vector<2x8xf32>
      %31 = math.exp %30 : vector<2x8xf32>
      %cst_21 = arith.constant dense<0.000000e+00> : vector<2xf32>
      %32 = vector.multi_reduction <add>, %31, %cst_21 [1] : vector<2x8xf32> to vector<2xf32>
      %33 = vector.shape_cast %32 : vector<2xf32> to vector<2x1xf32>
      %34 = math.log %33 : vector<2x1xf32>
      %35 = vector.broadcast %34 : vector<2x1xf32> to vector<2x8xf32>
      %36 = arith.subf %30, %35 : vector<2x8xf32>
      %37 = tpu.iota {dimensions = array<i32: 1>} : vector<2x8xi32>
      %38 = vector.broadcast %18 : vector<2x1xi32> to vector<2x8xi32>
      %39 = arith.cmpi eq, %37, %38 : vector<2x8xi32>
      %40 = arith.extui %39 : vector<2x8xi1> to vector<2x8xi32>
      %41 = arith.sitofp %40 : vector<2x8xi32> to vector<2x8xf32>
      %42 = arith.mulf %41, %28 : vector<2x8xf32>
      %43 = vector.shape_cast %42 : vector<2x8xf32> to vector<1x2x8xf32>
      %cst_22 = arith.constant dense<0.000000e+00> : vector<1xf32>
      %44 = vector.multi_reduction <add>, %43, %cst_22 [1, 2] : vector<1x2x8xf32> to vector<1xf32>
      %45 = vector.shape_cast %44 : vector<1xf32> to vector<1x1x1xf32>
      %46 = vector.extract %45[0, 0, 0] : f32 from vector<1x1x1xf32>
      %cst_23 = arith.constant 0.000000e+00 : f32
      %47 = arith.subf %cst_23, %46 : f32
      %cst_24 = arith.constant 0.333333343 : f32
      %48 = vector.broadcast %cst_24 : f32 to vector<2x8xf32>
      %49 = arith.mulf %16, %48 : vector<2x8xf32>
      %cst_25 = arith.constant dense<0xFF800000> : vector<2xf32>
      %50 = vector.multi_reduction <maximumf>, %49, %cst_25 [1] : vector<2x8xf32> to vector<2xf32>
      %51 = vector.shape_cast %50 : vector<2xf32> to vector<2x1xf32>
      %52 = vector.broadcast %51 : vector<2x1xf32> to vector<2x8xf32>
      %53 = arith.subf %49, %52 : vector<2x8xf32>
      %54 = math.exp %53 : vector<2x8xf32>
      %cst_26 = arith.constant dense<0.000000e+00> : vector<2xf32>
      %55 = vector.multi_reduction <add>, %54, %cst_26 [1] : vector<2x8xf32> to vector<2xf32>
      %56 = vector.shape_cast %55 : vector<2xf32> to vector<2x1xf32>
      %57 = vector.broadcast %56 : vector<2x1xf32> to vector<2x8xf32>
      %58 = arith.divf %54, %57 : vector<2x8xf32>
      %59 = math.log %56 : vector<2x1xf32>
      %60 = vector.broadcast %59 : vector<2x1xf32> to vector<2x8xf32>
      %61 = arith.subf %53, %60 : vector<2x8xf32>
      %62 = arith.subf %61, %36 : vector<2x8xf32>
      %63 = arith.mulf %58, %62 : vector<2x8xf32>
      %64 = vector.shape_cast %63 : vector<2x8xf32> to vector<1x2x8xf32>
      %cst_27 = arith.constant dense<0.000000e+00> : vector<1xf32>
      %65 = vector.multi_reduction <add>, %64, %cst_27 [1, 2] : vector<1x2x8xf32> to vector<1xf32>
      %66 = vector.shape_cast %65 : vector<1xf32> to vector<1x1x1xf32>
      %67 = vector.extract %66[0, 0, 0] : f32 from vector<1x1x1xf32>
      %cst_28 = arith.constant 5.000000e-01 : f32
      %68 = arith.mulf %47, %cst_28 : f32
      %cst_29 = arith.constant 9.000000e+00 : f32
      %69 = arith.mulf %67, %cst_29 : f32
      %cst_30 = arith.constant 5.000000e-01 : f32
      %70 = arith.mulf %69, %cst_30 : f32
      %71 = arith.addf %68, %70 : f32
      %cst_31 = arith.constant 5.000000e-01 : f32
      %72 = arith.mulf %71, %cst_31 : f32
      %c0_32 = arith.constant 0 : index
      %c0_33 = arith.constant 0 : index
      %73 = memref.load %arg7[%c0_32, %c0_33] : memref<1x1xf32, #tpu.memory_space<smem>>
      memref.store %72, %arg7[%c0_32, %c0_33] : memref<1x1xf32, #tpu.memory_space<smem>>
    } else {
    }
    return
  }
  func.func @transform_0(%arg0: i32, %arg1: i32) -> (i32, i32) {
    %c0_i32 = arith.constant 0 : i32
    return %arg0, %arg1 : i32, i32
  }
  func.func @transform_1(%arg0: i32, %arg1: i32) -> (i32, i32) {
    %c0_i32 = arith.constant 0 : i32
    %c0_i32_0 = arith.constant 0 : i32
    return %c0_i32, %arg1 : i32, i32
  }
  func.func @transform_2(%arg0: i32, %arg1: i32) -> (i32, i32) {
    %c0_i32 = arith.constant 0 : i32
    %c0_i32_0 = arith.constant 0 : i32
    %c0_i32_1 = arith.constant 0 : i32
    return %c0_i32, %c0_i32_0 : i32, i32
  }
  func.func @transform_3(%arg0: i32, %arg1: i32) -> (i32, i32) {
    %c0_i32 = arith.constant 0 : i32
    %c0_i32_0 = arith.constant 0 : i32
    return %arg0, %c0_i32 : i32, i32
  }
  func.func @transform_4(%arg0: i32, %arg1: i32) -> (i32, i32) {
    %c0_i32 = arith.constant 0 : i32
    %c0_i32_0 = arith.constant 0 : i32
    return %arg0, %c0_i32 : i32, i32
  }
  func.func @transform_5(%arg0: i32, %arg1: i32) -> (i32, i32) {
    %c0_i32 = arith.constant 0 : i32
    %c0_i32_0 = arith.constant 0 : i32
    return %arg0, %c0_i32 : i32, i32
  }
}

</mosaic_0001>

<bundles_post_ra>
// kernel: tpu_custom_call.1
= control target key start
LH: loop header
LB: loop body
LE: loop exit
PB: predicated region body
PF: predicated region fallthrough
CT: control target
= control target key end

     0   :  { %10 = vsyncpa [#allocation4], 0  ;;  %s500_s0 = inlined_call_operand.hbm [shape: f32[2,1024], index: 0, kind: input, shape index: {}]   ;;  %s501_s1 = inlined_call_operand.hbm [shape: bf16[8,1024], index: 1, kind: input, shape index: {}]   ;;  %s502_s2 = inlined_call_operand.vmem [shape: f32[1,8], index: 2, kind: input, shape index: {}]   ;;  %s503_s3 = inlined_call_operand.vmem [shape: f32[2,8], index: 3, kind: input, shape index: {}]   ;;  %s504_s4 = inlined_call_operand.vmem [shape: s32[2,1], index: 4, kind: input, shape index: {}]   ;;  %s505_s5 = inlined_call_operand.hbm [shape: f32[1,1], index: 5, kind: output, shape index: {}]  }
   0x1   :  { %11 = vsyncpa [#allocation7], 0 }
   0x2   :  { %12 = vsyncpa [#allocation5], 0  ;;  %s18_s20 = sshll.u32 %s500_s0, 4  ;;  %s436_s21 = smov [#allocation3]   ;;  %s19_s20 = int_to_ptr.hbm [resolvable:$true] %s18_s20 }
   0x3   :  { %s20_s22 = sshll.u32 %s436_s21, 4  ;;  %s29_s25 = sshll.u32 %s501_s1, 4  ;;  %s21_s22 = int_to_ptr.vmem [resolvable:$true] %s20_s22  ;;  %s30_s25 = int_to_ptr.hbm [resolvable:$true] %s29_s25 }
   0x4   :  { %23 = dma.hbm_to_vmem [thread:$0]  %s19_s20, 256, %s21_s22, [#allocation4]  }
   0x5   :  { %s437_s26 = smov [#allocation6]  }
   0x6   :  { %s31_s27 = sshll.u32 %s437_s26, 4  ;;  %s32_s27 = int_to_ptr.vmem [resolvable:$true] %s31_s27 }
   0x7   :  { %34 = dma.hbm_to_vmem [thread:$0]  %s30_s25, 512, %s32_s27, [#allocation7]  }
   0x8   :  { %430 = dma.done.wait [#allocation4], 256  }
   0x9   :  { %431 = vsyncadd [#allocation4], 4294967040 }
   0xa   :  { %432 = dma.done.wait [#allocation7], 512  }
   0xb   :  { %433 = vsyncadd [#allocation7], 4294966784  ;;  %v87_v0 = vld [vmem:[#allocation6] sm:$0xff]  ;;  %v88_v1 = vld [vmem:[#allocation6 + $0x8] sm:$0xff]  ;;  %vm54_vm0 = vcmask 58368   ;;  %v438_v38 = vmov 0.0  }
   0xc   :  { %v56_v2 = vld [vmem:[#allocation3] sm:$0xff]  ;;  %v96_v3 = vunpack.c.l.b16 %v87_v0  ;;  %v97_v4 = vunpack.c.h.b16 %v87_v0  ;;  %v98_v5 = vunpack.c.l.b16 %v88_v1  ;;  %v99_v6 = vunpack.c.h.b16 %v88_v1  ;;  %v90_v7 = vld [vmem:[#allocation6 + $0x18] sm:$0xff]  ;;  %55 = vst.msk [vmem:[#allocation2] sm:$0x3] %vm54_vm0, %v438_v38  ;;  %v355_v0 = vld [vmem:[%s502_s2] ss:$0 sm:$0xff] }
   0xd   :  { %60 = vst [vmem:[#allocation1] ss:$4 sm:$0xff] %v56_v2  ;;  %v89_v8 = vld [vmem:[#allocation6 + $0x10] sm:$0xff]  ;;  %v57_v9 = vld [vmem:[#allocation3 + $0x8] sm:$0xff]  ;;  %v102_v10 = vunpack.c.l.b16 %v90_v7  ;;  %v103_v12 = vunpack.c.h.b16 %v90_v7  ;;  %v439_v7 = vmov 0   ;;  %s331_s12 = sshll.u32 %s505_s5, 4  ;;  %s332_s12 = int_to_ptr.hbm [resolvable:$true] %s331_s12 }
   0xe   :  { %v100_v11 = vunpack.c.l.b16 %v89_v8  ;;  %v101_v13 = vunpack.c.h.b16 %v89_v8  ;;  %62 = vst [vmem:[#allocation1 + $0x20] ss:$4 sm:$0xff] %v57_v9  ;;  %v104_v14 = vpack.c.b16 %v96_v3, %v96_v3  ;;  %v105_v15 = vpack.c.b16 %v97_v4, %v97_v4  ;;  %353 = vset.pattern.permute.xlu2 %v439_v7  ;;  %354 = vset.pattern.permute.xlu0 %v439_v7  ;;  %s440_s15 = smov [#allocation8]  }
   0xf   :  { %v106_v16 = vpack.c.b16 %v98_v5, %v98_v5  ;;  %v107_v17 = vpack.c.b16 %v99_v6, %v99_v6  ;;  %v110_v18 = vpack.c.b16 %v102_v10, %v102_v10  ;;  %v111_v20 = vpack.c.b16 %v103_v12, %v103_v12  ;;  %v236_v5 = vld [vmem:[%s503_s3] sm:$0x3] }
  0x10   :  { %v108_v19 = vpack.c.b16 %v100_v11, %v100_v11  ;;  %v109_v21 = vpack.c.b16 %v101_v13, %v101_v13  ;;  %127 = vmatpush.bf16.xpose.msra.mxu0 %v104_v14  ;;  %140 = vmatpush.bf16.xpose.msra.mxu1 %v105_v15  ;;  %v238_v6 = vsel %vm54_vm0, %v236_v5, -inf }
  0x11   :  { %153 = vmatpush.bf16.xpose.msra.mxu2 %v106_v16  ;;  %166 = vmatpush.bf16.xpose.msra.mxu3 %v107_v17 }
  0x13   :  { %v91_v59 = vld [vmem:[#allocation2] sm:$0x3] }
  0x14   :  { %v63_v22 = vld.sshfl [vmem:[#allocation1] sm:$0xff pattern:$0x73625140]  ;;  %v64_v23 = vld.sshfl [vmem:[#allocation1 + $0x8] sm:$0xff pattern:$0x73625140] }
  0x15   :  { %v79_v24 = vpack.c.bf16 %v63_v22, %v63_v22  ;;  %v80_v25 = vpack.c.bf16 %v64_v23, %v64_v23  ;;  %v65_v26 = vld.sshfl [vmem:[#allocation1 + $0x10] sm:$0xff pattern:$0x73625140]  ;;  %v66_v27 = vld.sshfl [vmem:[#allocation1 + $0x18] sm:$0xff pattern:$0x73625140] }
  0x16   :  { %v81_v28 = vpack.c.bf16 %v65_v26, %v65_v26  ;;  %v82_v29 = vpack.c.bf16 %v66_v27, %v66_v27  ;;  %v67_v30 = vld.sshfl [vmem:[#allocation1 + $0x20] sm:$0xff pattern:$0x73625140]  ;;  %v68_v31 = vld.sshfl [vmem:[#allocation1 + $0x28] sm:$0xff pattern:$0x73625140]  ;;  %v259_v27 = vlaneseq }
  0x17   :  { %128 = vmatmul.bf16.vlgmr.msra.gmra.mxu0 %v79_v24  ;;  %141 = vmatmul.bf16.vlgmr.msra.gmra.mxu1 %v80_v25  ;;  %v69_v32 = vld.sshfl [vmem:[#allocation1 + $0x30] sm:$0xff pattern:$0x73625140]  ;;  %v70_v33 = vld.sshfl [vmem:[#allocation1 + $0x38] sm:$0xff pattern:$0x73625140]  ;;  %v83_v34 = vpack.c.bf16 %v67_v30, %v67_v30  ;;  %v84_v35 = vpack.c.bf16 %v68_v31, %v68_v31 }
  0x18   :  { %179 = vmatpush.bf16.xpose.msrb.mxu0 %v108_v19  ;;  %192 = vmatpush.bf16.xpose.msrb.mxu1 %v109_v21  ;;  %v85_v36 = vpack.c.bf16 %v69_v32, %v69_v32  ;;  %v86_v37 = vpack.c.bf16 %v70_v33, %v70_v33  ;;  %v237_v22 = vld [vmem:[%s504_s4] sm:$0x3]  ;;  %v260_v32 = vand.u32 127, %v259_v27 }
  0x19   :  { %205 = vmatpush.bf16.xpose.msrb.mxu2 %v110_v18  ;;  %218 = vmatpush.bf16.xpose.msrb.mxu3 %v111_v20 }
  0x1a   :  { %154 = vmatmul.bf16.vlgmr.msra.gmra.mxu2 %v81_v28  ;;  %167 = vmatmul.bf16.vlgmr.msra.gmra.mxu3 %v82_v29 }
  0x27   :  { %180 = vmatmul.bf16.vlgmr.msrb.gmra.mxu0 %v83_v34  ;;  %193 = vmatmul.bf16.vlgmr.msrb.gmra.mxu1 %v84_v35 }
  0x2a   :  { %206 = vmatmul.bf16.vlgmr.msrb.gmra.mxu2 %v85_v36  ;;  %219 = vmatmul.bf16.vlgmr.msrb.gmra.mxu3 %v86_v37 }
  0x94   :  { %v129_v39 = vpop.f32.mrf.mxu0  ;;  %v142_v40 = vpop.f32.mrf.mxu1 }
  0x95   :  { %v143_v45 = vadd.f32 %v142_v40, %v129_v39 }
  0x9c   :  { %v131_v43 = vpop.f32.mrf.mxu0  ;;  %v144_v44 = vpop.f32.mrf.mxu1 }
  0x9d   :  { %v155_v41 = vpop.f32.mrf.mxu2  ;;  %v168_v42 = vpop.f32.mrf.mxu3 }
  0x9e   :  { %v156_v46 = vadd.f32 %v155_v41, %v143_v45 }
  0xa0   :  { %v169_v49 = vadd.f32 %v168_v42, %v156_v46 }
  0xa4   :  { %v181_v50 = vpop.f32.mrf.mxu0  ;;  %v194_v51 = vpop.f32.mrf.mxu1 }
  0xa5   :  { %v157_v47 = vpop.f32.mrf.mxu2  ;;  %v170_v48 = vpop.f32.mrf.mxu3  ;;  %v182_v52 = vadd.f32 %v181_v50, %v169_v49 }
  0xa7   :  { %v195_v53 = vadd.f32 %v194_v51, %v182_v52 }
  0xac   :  { %v183_v57 = vpop.f32.mrf.mxu0  ;;  %v196_v58 = vpop.f32.mrf.mxu1 }
  0xad   :  { %v207_v54 = vpop.f32.mrf.mxu2  ;;  %v220_v55 = vpop.f32.mrf.mxu3 }
  0xae   :  { %v208_v56 = vadd.f32 %v207_v54, %v195_v53 }
  0xb0   :  { %v221_v60 = vadd.f32 %v220_v55, %v208_v56 }
  0xb2   :  { %v224_v61 = vadd.f32 %v221_v60, %v91_v59 }
  0xb4   :  { %226 = vst.msk [vmem:[#allocation2] sm:$0x3] %vm54_vm0, %v224_v61 }
  0xb5   :  { %v209_v62 = vpop.f32.mrf.mxu2  ;;  %v222_v63 = vpop.f32.mrf.mxu3 }
  0xbb   :  { %v230_v1 = vld [vmem:[#allocation2] sm:$0x3] }
  0xbc   :  { %v235_v2 = vadd.f32 %v355_v0, %v230_v1 }
  0xbe   :  { %v279_v3 = vmul.f32 0.33333334, %v235_v2 }
  0xc0   :  { %v280_v4 = vsel %vm54_vm0, %v279_v3, -inf }
  0xc1   :  { %281 = vmax.xlane.f32.xlu0 %v280_v4 }
  0xc9   :  { %239 = vmax.xlane.f32.xlu0 %v238_v6 }
 0x134   :  { %v282_v8 = vpop.xlane.xlu0 %281 }
 0x135   :  { %v283_v9 = vsub.f32 %v279_v3, %v282_v8 }
 0x137   :  { %v284_v10 = vmul.f32 1.442695, %v283_v9 }
 0x139   :  { %356 = vpow2.f32 %v284_v10 }
 0x13c   :  { %v240_v11 = vpop.xlane.xlu0 %239 }
 0x13d   :  { %v241_v12 = vsub.f32 %v236_v5, %v240_v11 }
 0x13f   :  { %v357_v13 = vpop.eup %356  ;;  %v242_v14 = vmul.f32 1.442695, %v241_v12  ;;  %v250_v15 = vmul.f32 0.33333334, %v241_v12 }
 0x140   :  { %v286_v16 = vsel %vm54_vm0, %v357_v13, 0.0 }
 0x141   :  { %358 = vpow2.f32 %v242_v14  ;;  %v251_v17 = vmul.f32 1.442695, %v250_v15  ;;  %287 = vadd.xlane.f32.xlu1 %v286_v16 }
 0x143   :  { %360 = vpow2.f32 %v251_v17 }
 0x147   :  { %v359_v18 = vpop.eup %358 }
 0x148   :  { %v244_v19 = vsel %vm54_vm0, %v359_v18, 0.0 }
 0x149   :  { %v361_v20 = vpop.eup %360  ;;  %245 = vadd.xlane.f32.xlu2 %v244_v19 }
 0x14a   :  { %v253_v21 = vsel %vm54_vm0, %v361_v20, 0.0 }
 0x14b   :  { %254 = vadd.xlane.f32.xlu1 %v253_v21 }
 0x161   :  { %262 = vperm.xlu2 %353, %v237_v22  }
 0x1b4   :  { %v288_v23 = vpop.xlane.xlu1 %287 }
 0x1b5   :  { %362 = vrcp.f32 %v288_v23  ;;  %v300_v33 = vand.u32 2147483648, %v288_v23  ;;  %vm294_vm2 = vweird.f32 %v288_v23  ;;  %v298_v35 = vand.u32 2147483647, %v288_v23 }
 0x1b6   :  { %364 = vlog2.f32 %v288_v23 }
 0x1b7   :  { %v301_v43 = vor.u32 1.1754944e-38, %v300_v33  ;;  %vm299_vm5 = vcmp.eq.f32.partialorder %v298_v35, 8.507059e+37 }
 0x1bb   :  { %v363_v24 = vpop.eup %362 }
 0x1bc   :  { %v290_v25 = vmul.f32 %v363_v24, %v288_v23  ;;  %v246_v26 = vpop.xlane.xlu2 %245  ;;  %vm295_vm1 = vweird.f32 %v363_v24  ;;  %v365_v31 = vpop.eup %364 }
 0x1bd   :  { %366 = vlog2.f32 %v246_v26  ;;  %vm296_vm3 = vmor %vm294_vm2, %vm295_vm1  ;;  %v305_v41 = vmul.f32 0.6931472, %v365_v31 }
 0x1be   :  { %v291_v28 = vsub.f32 1.0, %v290_v25  ;;  %v255_v29 = vpop.xlane.xlu1 %254 }
 0x1bf   :  { %368 = vlog2.f32 %v255_v29  ;;  %v306_v50 = vsub.f32 %v283_v9, %v305_v41 }
 0x1c0   :  { %v292_v30 = vmul.f32 %v363_v24, %v291_v28 }
 0x1c2   :  { %v293_v34 = vadd.f32 %v363_v24, %v292_v30 }
 0x1c3   :  { %v367_v36 = vpop.eup %366 }
 0x1c4   :  { %v248_v37 = vmul.f32 0.6931472, %v367_v36  ;;  %v263_v39 = vpop.permute.xlu2 %262  ;;  %v297_v40 = vsel %vm296_vm3, %v363_v24, %v293_v34 }
 0x1c5   :  { %v369_v42 = vpop.eup %368  ;;  %vm264_vm4 = vcmp.eq.s32.totalorder %v260_v32, %v263_v39  ;;  %v302_v47 = vsel %vm299_vm5, %v301_v43, %v297_v40 }
 0x1c6   :  { %v249_v44 = vsub.f32 %v241_v12, %v248_v37  ;;  %v257_v45 = vmul.f32 0.6931472, %v369_v42  ;;  %v343_v46 = vsel %vm264_vm4, 1.0, %v438_v38  ;;  %v303_v52 = vmul.f32 %v357_v13, %v302_v47 }
 0x1c8   :  { %v258_v48 = vsub.f32 %v250_v15, %v257_v45  ;;  %v267_v49 = vmul.f32 %v343_v46, %v249_v44 }
 0x1ca   :  { %v268_v51 = vsel %vm54_vm0, %v267_v49, 0.0  ;;  %v307_v53 = vsub.f32 %v306_v50, %v258_v48 }
 0x1cb   :  { %269 = vadd.xlane.f32.xlu0 %v268_v51 }
 0x1cc   :  { %v308_v54 = vmul.f32 %v307_v53, %v303_v52 }
 0x1ce   :  { %v309_v55 = vsel %vm54_vm0, %v308_v54, 0.0 }
 0x1cf   :  { %310 = vadd.xlane.f32.xlu1 %v309_v55 }
 0x23e   :  { %v270_v56 = vpop.xlane.xlu0 %269 }
 0x23f   :  { %v271_v57 = vrot.slane %v270_v56, 4 }
 0x241   :  { %v272_v58 = vadd.f32 %v271_v57, %v270_v56 }
 0x242   :  { %v311_v59 = vpop.xlane.xlu1 %310 }
 0x243   :  { %v273_v60 = vrot.slane %v272_v58, 2  ;;  %v312_v38 = vrot.slane %v311_v59, 4 }
 0x245   :  { %v313_v61 = vadd.f32 %v312_v38, %v311_v59  ;;  %v274_v62 = vadd.f32 %v273_v60, %v272_v58 }
 0x247   :  { %v314_v63 = vrot.slane %v313_v61, 2  ;;  %v275_v0 = vrot.slane %v274_v62, 1 }
 0x249   :  { %v315_v1 = vadd.f32 %v314_v63, %v313_v61  ;;  %v276_v2 = vadd.f32 %v275_v0, %v274_v62 }
 0x24b   :  { %344 = vpush %v276_v2  ;;  %v316_v3 = vrot.slane %v315_v1, 1 }
 0x24d   :  { %v317_v4 = vadd.f32 %v316_v3, %v315_v1 }
 0x24f   :  { %346 = vpush %v317_v4 }
 0x27c   :  { %s345_s4 = spop %344 }
 0x27d   :  { %s278_s30 = ssub.f32 0.0, %s345_s4 }
 0x27f   :  { %s319_s8 = smul.f32 0.5, %s278_s30 }
 0x280   :  { %s347_s6 = spop %346 }
 0x281   :  { %s320_s7 = smul.f32 9.0, %s347_s6 }
 0x283   :  { %s321_s9 = smul.f32 0.5, %s320_s7 }
 0x285   :  { %s322_s13 = sadd.f32 %s321_s9, %s319_s8 }
 0x287   :  { %s323_s14 = smul.f32 0.5, %s322_s13 }
 0x289   :  { %325 = sst [smem:[#allocation8]] %s323_s14 }
 0x28a   :  { %334 = dma.smem_to_hbm %s440_s15, 16, %s332_s12, [#allocation5]  }
 0x28b   :  { %434 = dma.done.wait [#allocation5], 16  }
 0x28c   :  { %435 = vsyncadd [#allocation5], 4294967280 }
 0x28d   :  { %339 = sfence }
 0x28e   :  { %340 = vsyncpa [#allocation4], 1 }
 0x28f   :  { %341 = vsyncpa [#allocation7], 1 }
 0x290   :  { %342 = vsyncpa [#allocation5], 1 }

</bundles_post_ra>
